<compile_context>
chip_gen: v7x
topology: tpu7x:2x2x1
jax: 0.10.0
libtpu: 0.0.40
codegen_flags: <defaults>
</compile_context>

<pallas_src>
import functools

import numpy as np
import jax
import jax.numpy as jnp
from jax.experimental import pallas as pl
from jax.experimental.pallas import tpu as pltpu

BN_SCALE = float(1.0 / np.sqrt(1.0 + 1e-5))  # eval-mode BatchNorm with default running stats
VMEM_LIMIT = 32 * 1024 * 1024                # explicit budget: fits v5e/v6e/v7x scoped VMEM


def _round_up(x, m):
    return (x + m - 1) // m * m


# ----------------------------- GEMM kernel -----------------------------

def _gemm_kernel(*refs, relu, has_bias, has_res):
    """out = [relu]( A @ B (+ bias) (+ res) ) with f32 accumulation.  Single K block."""
    refs = list(refs)
    a_ref = refs.pop(0)
    b_ref = refs.pop(0)
    bias_ref = refs.pop(0) if has_bias else None
    res_ref = refs.pop(0) if has_res else None
    o_ref = refs.pop(0)

    acc = jnp.dot(a_ref[...], b_ref[...], preferred_element_type=jnp.float32)
    if has_bias:
        acc = acc + bias_ref[...]                      # (1, TN) broadcasts
    if has_res:
        acc = acc + res_ref[...].astype(jnp.float32)   # fused residual
    if relu:
        acc = jnp.maximum(acc, 0.0)
    o_ref[...] = acc.astype(o_ref.dtype)


def gemm(a, b, bias=None, res=None, relu=False, out_dtype=jnp.bfloat16):
    """(M,K) @ (K,N) with optional bias / residual / ReLU fused in the epilogue.

    bf16 operands, f32 accumulation, single K block (max K used here is 512).
    """
    M, K = a.shape
    K2, N = b.shape
    assert K == K2
    Np = _round_up(N, 128)
    TN = min(512, Np)                       # keep the whole B panel resident for N<=512
    cap = 2048 if K <= 256 else 512         # bigger M tiles when K is small
    Ma = _round_up(M, 8)
    TM = Ma if Ma <= cap else cap
    Mp = _round_up(M, TM)

    a_p = jnp.pad(a.astype(jnp.bfloat16), ((0, Mp - M), (0, 0)))
    b_p = jnp.pad(b.astype(jnp.bfloat16), ((0, 0), (0, Np - N)))

    args = [a_p, b_p]
    in_specs = [pl.BlockSpec((TM, K), lambda i, j: (i, 0)),
                pl.BlockSpec((K, TN), lambda i, j: (0, j))]
    if bias is not None:
        args.append(jnp.pad(bias.astype(jnp.float32), (0, Np - N)).reshape(1, Np))
        in_specs.append(pl.BlockSpec((1, TN), lambda i, j: (0, j)))
    if res is not None:
        args.append(jnp.pad(res.astype(jnp.bfloat16), ((0, Mp - M), (0, Np - N))))
        in_specs.append(pl.BlockSpec((TM, TN), lambda i, j: (i, j)))

    out = pl.pallas_call(
        functools.partial(_gemm_kernel, relu=relu,
                          has_bias=bias is not None, has_res=res is not None),
        out_shape=jax.ShapeDtypeStruct((Mp, Np), out_dtype),
        grid=(Mp // TM, Np // TN),
        in_specs=in_specs,
        out_specs=pl.BlockSpec((TM, TN), lambda i, j: (i, j)),
        compiler_params=pltpu.CompilerParams(
            dimension_semantics=("parallel", "parallel"),
            vmem_limit_bytes=VMEM_LIMIT),
    )(*args)
    return out[:M, :N]


# ----------------------------- implicit-im2col 3x3 conv -----------------------------

def _conv3x3_kernel(*refs, relu, has_res, stride, toh, w_out, w_pad, pairs):
    """Batched implicit-im2col 3x3 conv (stride 1 or 2, pad 1).

    refs (in order):
      x_phase[0..stride-1]: (Hp, Wph, Cin)   column-phase-split padded image (bf16, VMEM)
      w_ref:                (9*Cin, Cout)    GEMM-form weights (bf16)
      res_ref (opt):        (TOH, W, Cout)   fused residual (bf16)
      o_ref:                (TOH, W, Cout)   output rows for this grid step (bf16)
      patch_ref (scratch):  (TOH*W_pad, 9*Cin)  im2col block for the whole row tile (bf16)

    The row loop only fills patch_ref; a single MXU GEMM of M = TOH*W_pad is issued per step.
    """
    refs = list(refs)
    x_phase = [refs.pop(0) for _ in range(stride)]
    w_ref = refs.pop(0)
    res_ref = refs.pop(0) if has_res else None
    o_ref = refs.pop(0)
    patch_ref = refs.pop(0)

    cin = x_phase[0].shape[-1]
    cout = o_ref.shape[-1]
    mb = pl.program_id(1)

    def load_tap(out_row, tap):
        di, dj = tap // 3, tap % 3
        # column phase split -> every load is a dense, unit-stride (W, Cin) slab
        return x_phase[dj % stride][stride * out_row + di, pl.ds(dj // stride, w_out), :]

    def fill_row(t, carry):
        out_row = mb * toh + t
        rows = pl.ds(pl.multiple_of(t * w_pad, 8), w_out)   # 8-aligned sublane start
        if pairs:
            # Cin == 64: pack two taps per 128-lane tile so every store is lane-aligned.
            for g in range(4):
                patch_ref[rows, 128 * g:128 * (g + 1)] = jnp.concatenate(
                    [load_tap(out_row, 2 * g), load_tap(out_row, 2 * g + 1)], axis=-1)
            patch_ref[rows, 512:512 + cin] = load_tap(out_row, 8)   # lone tap, aligned start
        else:
            # Cin is a multiple of 128: every tap write is already lane-aligned.
            for tap in range(9):
                patch_ref[rows, tap * cin:(tap + 1) * cin] = load_tap(out_row, tap)
        return carry

    jax.lax.fori_loop(0, toh, fill_row, 0, unroll=2)

    # one big GEMM for the whole row tile (garbage rows between w_out and w_pad are sliced away)
    acc = jnp.dot(patch_ref[...], w_ref[...], preferred_element_type=jnp.float32)
    acc = acc.reshape(toh, w_pad, cout)[:, :w_out, :]
    if has_res:
        acc = acc + res_ref[...].astype(jnp.float32)
    if relu:
        acc = jnp.maximum(acc, 0.0)
    o_ref[...] = acc.astype(o_ref.dtype)


def _pick_toh(h_out, w_pad, k9):
    """Largest divisor of H_out keeping M = toh*w_pad <= 2048 and patch <= ~4.5 MiB bf16."""
    best = 1
    for cand in range(1, h_out + 1):
        if h_out % cand == 0 and cand * w_pad <= 2048 \
                and cand * w_pad * k9 * 2 <= 9 * (1 << 19):
            best = cand
    return best


def conv3x3_implicit(x, w_gemm, stride=1, res=None, relu=True):
    """3x3 pad-1 conv (stride 1 or 2) without materialising any im2col matrix in HBM."""
    n, h, w, cin = x.shape
    k9, cout = w_gemm.shape
    assert k9 == 9 * cin and h % stride == 0 and w % stride == 0
    h_out, w_out = h // stride, w // stride
    w_pad = _round_up(w_out, 8)
    toh = _pick_toh(h_out, w_pad, k9)

    xp = jnp.pad(x.astype(jnp.bfloat16), ((0, 0), (1, 1), (1, 1), (0, 0)))
    # split padded columns into `stride` phases so all in-kernel loads are dense/unit-stride
    phases = [xp[:, :, p::stride, :] for p in range(stride)]

    args = list(phases) + [w_gemm.astype(jnp.bfloat16)]
    in_specs = [pl.BlockSpec((None,) + ph.shape[1:], lambda nb, mb: (nb, 0, 0, 0))
                for ph in phases]
    in_specs.append(pl.BlockSpec((k9, cout), lambda nb, mb: (0, 0)))
    if res is not None:
        args.append(res.astype(jnp.bfloat16))
        in_specs.append(pl.BlockSpec((None, toh, w_out, cout), lambda nb, mb: (nb, mb, 0, 0)))

    kernel = functools.partial(
        _conv3x3_kernel, relu=relu, has_res=res is not None, stride=stride,
        toh=toh, w_out=w_out, w_pad=w_pad, pairs=(cin == 64))

    return pl.pallas_call(
        kernel,
        out_shape=jax.ShapeDtypeStruct((n, h_out, w_out, cout), jnp.bfloat16),
        grid=(n, h_out // toh),
        in_specs=in_specs,
        out_specs=pl.BlockSpec((None, toh, w_out, cout), lambda nb, mb: (nb, mb, 0, 0)),
        scratch_shapes=[pltpu.VMEM((toh * w_pad, k9), jnp.bfloat16)],
        compiler_params=pltpu.CompilerParams(
            dimension_semantics=("parallel", "parallel"),
            vmem_limit_bytes=VMEM_LIMIT),
    )(*args)


def _softmax_last_kernel(x_ref, o_ref):
    x = x_ref[...]
    m = jnp.max(x, axis=-1, keepdims=True)
    e = jnp.exp(x - m)
    o_ref[...] = e / jnp.sum(e, axis=-1, keepdims=True)


def softmax_last(x):
    """Row softmax over the last dim (tiny array -> single VMEM block)."""
    return pl.pallas_call(
        _softmax_last_kernel,
        out_shape=jax.ShapeDtypeStruct(x.shape, jnp.float32),
    )(x.astype(jnp.float32))


# ----------------------------- conv / pool glue -----------------------------

def _extract_patches(x, kh, kw, stride, pad):
    # (N, H, W, C) -> (N, OH, OW, kh*kw, C)  tap-major, channel inner (explicit im2col path)
    if pad:
        x = jnp.pad(x, ((0, 0), (pad, pad), (pad, pad), (0, 0)))
    n, hh, ww, c = x.shape
    oh = (hh - kh) // stride + 1
    ow = (ww - kw) // stride + 1
    taps = []
    for i in range(kh):
        for j in range(kw):
            taps.append(x[:, i:i + stride * (oh - 1) + 1:stride,
                          j:j + stride * (ow - 1) + 1:stride, :])
    return jnp.stack(taps, axis=3)


def conv2d_explicit(x, w_gemm, kh, kw, stride, pad,
                    bias=None, res=None, relu=False, out_dtype=jnp.bfloat16):
    """Explicit-im2col conv (stem and 1x1 convs only)."""
    n, h, w, cin = x.shape
    if kh == 1 and kw == 1:
        xs = x if stride == 1 else x[:, ::stride, ::stride, :]
        nb, oh, ow, _ = xs.shape
        a = xs.reshape(nb * oh * ow, cin)
    else:
        p = _extract_patches(x, kh, kw, stride, pad)
        nb, oh, ow, t, _ = p.shape
        a = p.reshape(nb * oh * ow, t * cin)
    cout = w_gemm.shape[1]
    r = None if res is None else res.reshape(nb * oh * ow, cout)
    y = gemm(a, w_gemm, bias=bias, res=r, relu=relu, out_dtype=out_dtype)
    return y.reshape(nb, oh, ow, cout)


def conv3x3(x, w_gemm, stride=1, res=None, relu=True):
    """3x3 pad-1 conv; all backbone 3x3 convs (stride 1 and 2) use the implicit kernel."""
    if x.shape[1] // stride >= 14:
        return conv3x3_implicit(x, w_gemm, stride=stride, res=res, relu=relu)
    return conv2d_explicit(x, w_gemm, 3, 3, stride, 1, res=res, relu=relu)


def maxpool_3x3_s2_p1(x):
    # Shifted strided-slice running max (fused by XLA under jit); zero pad is safe post-ReLU.
    n, h, w, c = x.shape
    oh, ow = h // 2, w // 2
    xp = jnp.pad(x, ((0, 0), (1, 1), (1, 1), (0, 0)))
    out = None
    for i in range(3):
        for j in range(3):
            s = jax.lax.slice(xp, (0, i, j, 0),
                              (n, i + 2 * (oh - 1) + 1, j + 2 * (ow - 1) + 1, c),
                              (1, 2, 2, 1))
            out = s if out is None else jnp.maximum(out, s)
    return out


# ----------------------------- parameters -----------------------------

BLOCKS = [
    ("layer1_0", 64, 64, 1), ("layer1_1", 64, 64, 1),
    ("layer2_0", 64, 128, 2), ("layer2_1", 128, 128, 1),
    ("layer3_0", 128, 256, 2), ("layer3_1", 256, 256, 1),
    ("layer4_0", 256, 512, 2), ("layer4_1", 512, 512, 1),
]


def _he(key, cout, cin, kh, kw):
    fan_in = cin * kh * kw
    return jax.random.normal(key, (cout, cin, kh, kw), jnp.float32) * np.sqrt(2.0 / fan_in)


def _gemm_w(w_oihw, scale=None):
    """OIHW -> (kh*kw*Cin, Cout) GEMM form (tap-major, channel inner), BN fold in f32, bf16 cast."""
    cout, cin, kh, kw = w_oihw.shape
    if scale is not None:
        w_oihw = w_oihw * scale
    return jnp.transpose(w_oihw, (2, 3, 1, 0)).reshape(kh * kw * cin, cout).astype(jnp.bfloat16)


def init_params(key):
    keys = iter(jax.random.split(key, 64))
    p = {}
    p["stem_w"] = _gemm_w(_he(next(keys), 64, 3, 7, 7), BN_SCALE)
    for name, cin, cout, stride in BLOCKS:
        p[name + "_c1"] = _gemm_w(_he(next(keys), cout, cin, 3, 3), BN_SCALE)
        p[name + "_c2"] = _gemm_w(_he(next(keys), cout, cout, 3, 3), BN_SCALE)
        if stride != 1 or cin != cout:
            p[name + "_ds"] = _gemm_w(_he(next(keys), cout, cin, 1, 1), BN_SCALE)
    # heads: fc_reg (4) and fc_cls (20) fused into one (512, 24) GEMM weight
    reg_w = _he(next(keys), 4, 512, 1, 1)
    cls_w = _he(next(keys), 20, 512, 1, 1)
    p["head_w"] = jnp.concatenate([_gemm_w(reg_w), _gemm_w(cls_w)], axis=1)
    p["head_b"] = 0.01 * jax.random.normal(next(keys), (24,), jnp.float32)
    return p


# ----------------------------- model forward -----------------------------

def resnet18_forward(p, x):
    # stem: conv7x7/s2 (+ folded BN) + ReLU + maxpool3x3/s2
    x = conv2d_explicit(x, p["stem_w"], 7, 7, 2, 3, relu=True)      # (N, 224, 224, 64)
    x = maxpool_3x3_s2_p1(x)                                        # (N, 112, 112, 64)
    for name, cin, cout, stride in BLOCKS:
        if stride != 1 or cin != cout:
            idn = conv2d_explicit(x, p[name + "_ds"], 1, 1, stride, 0, relu=False)
        else:
            idn = x
        out = conv3x3(x, p[name + "_c1"], stride=stride, relu=True)
        # second conv: residual add + ReLU fused into the conv epilogue
        x = conv3x3(out, p[name + "_c2"], stride=1, res=idn, relu=True)
    return x                                                        # (N, 14, 14, 512)


@jax.jit
def fastrcnn_forward(p, x_img):
    x = x_img.astype(jnp.bfloat16)
    feat = resnet18_forward(p, x)                   # (N, 14, 14, 512) bf16
    # TODO(synk): reference RPN is computed then discarded (and its `x + x_gap` is an invalid
    #             18-vs-36-channel broadcast); omitted so no dead MXU/HBM work is executed.
    rois_pooled = feat                              # ROIPooling returns x unchanged
    # reference loops over the batch and keeps only the LAST element's head outputs
    rp = rois_pooled[-1].reshape(14 * 14, 512)
    head = gemm(rp, p["head_w"], bias=p["head_b"], relu=False,
                out_dtype=jnp.float32)              # (196, 24) = [bbox(4) | cls(20)]
    bbox = head[:, :4]
    cls = softmax_last(head[:, 4:24])               # nn.Softmax() on 3D CHW -> channel dim
    bbox = jnp.transpose(bbox.reshape(14, 14, 4), (2, 0, 1))   # (4, 14, 14)
    cls = jnp.transpose(cls.reshape(14, 14, 20), (2, 0, 1))    # (20, 14, 14)
    return bbox, cls


# ----------------------------- main -----------------------------

def _np_conv3x3_ref(x_bf16, w_gemm, stride):
    """Numpy im2col reference matching _gemm_w's (tap-major, channel-inner) layout."""
    x = np.asarray(x_bf16, np.float32)
    xp = np.pad(x, ((0, 0), (1, 1), (1, 1), (0, 0)))
    n, hp, wp, cin = xp.shape
    ho = (hp - 3) // stride + 1
    wo = (wp - 3) // stride + 1
    cols = [xp[:, di:di + stride * (ho - 1) + 1:stride,
               dj:dj + stride * (wo - 1) + 1:stride, :]
            for di in range(3) for dj in range(3)]
    a = np.concatenate(cols, axis=-1).reshape(-1, 9 * cin)
    return (a @ np.asarray(w_gemm, np.float32)).reshape(n, ho, wo, -1)


if __name__ == "__main__":
    # --- self-check 1: fused GEMM kernel (bias + residual + ReLU, bf16 in / f32 acc) ---
    k0 = jax.random.PRNGKey(42)
    ka, kb, kc, kd = jax.random.split(k0, 4)
    a_s = jax.random.normal(ka, (96, 200), jnp.float32).astype(jnp.bfloat16)
    b_s = jax.random.normal(kb, (200, 72), jnp.float32).astype(jnp.bfloat16)
    bias_s = jax.random.normal(kc, (72,), jnp.float32)
    res_s = jax.random.normal(kd, (96, 72), jnp.float32).astype(jnp.bfloat16)
    got = gemm(a_s, b_s, bias=bias_s, res=res_s, relu=True, out_dtype=jnp.float32)
    ref = np.maximum(np.asarray(a_s, np.float32) @ np.asarray(b_s, np.float32)
                     + np.asarray(bias_s) + np.asarray(res_s, np.float32), 0.0)
    np.testing.assert_allclose(np.asarray(got), ref, rtol=1e-2, atol=1e-2)

    # --- self-check 2: implicit conv, stride 1, Cin=64 (paired-tap path) + fused res/ReLU ---
    kx, kw1, kr1, kx2, kw2 = jax.random.split(ka, 5)
    xs = jax.random.normal(kx, (2, 16, 16, 64), jnp.float32).astype(jnp.bfloat16)
    wg = _gemm_w(jax.random.normal(kw1, (64, 64, 3, 3), jnp.float32) * 0.1)
    rs = jax.random.normal(kr1, (2, 16, 16, 64), jnp.float32).astype(jnp.bfloat16)
    got_c = conv3x3_implicit(xs, wg, stride=1, res=rs, relu=True)
    ref_c = np.maximum(_np_conv3x3_ref(xs, wg, 1) + np.asarray(rs, np.float32), 0.0)
    np.testing.assert_allclose(np.asarray(got_c, np.float32), ref_c, rtol=2e-2, atol=5e-2)

    # --- self-check 3: implicit conv, stride 2, Cin=128 (phase-split loads, W padded to 16) ---
    xs2 = jax.random.normal(kx2, (1, 28, 28, 128), jnp.float32).astype(jnp.bfloat16)
    wg2 = _gemm_w(jax.random.normal(kw2, (128, 128, 3, 3), jnp.float32) * 0.05)
    got_s2 = conv3x3_implicit(xs2, wg2, stride=2, relu=False)
    ref_s2 = _np_conv3x3_ref(xs2, wg2, 2)
    assert got_s2.shape == (1, 14, 14, 128), got_s2.shape
    np.testing.assert_allclose(np.asarray(got_s2, np.float32), ref_s2, rtol=2e-2, atol=8e-2)

    # --- full forward ---
    key = jax.random.PRNGKey(0)
    pkey, xkey = jax.random.split(key)
    params = init_params(pkey)

    # reference input is NCHW (2, 3, 448, 448) (the module hard-codes 448 -> 14x14 features);
    # we build the NHWC equivalent directly.
    x = jax.random.normal(xkey, (2, 448, 448, 3), jnp.float32)

    bbox, cls = fastrcnn_forward(params, x)
    jax.block_until_ready((bbox, cls))

    assert bbox.shape == (4, 14, 14), bbox.shape
    assert cls.shape == (20, 14, 14), cls.shape
    assert np.isfinite(np.asarray(bbox)).all() and np.isfinite(np.asarray(cls)).all()
    # class softmax sums to 1 over the channel dim
    np.testing.assert_allclose(np.asarray(jnp.sum(cls, axis=0)), 1.0, atol=1e-4)

    print("KERNEL_OK")
</pallas_src>

<mosaic_0001>
module attributes {stable_mosaic.version = 11 : i64} {
  func.func @_gemm_kernel(%arg0: i32, %arg1: i32, %arg2: memref<96x200xbf16, #tpu.memory_space<vmem>>, %arg3: memref<200x128xbf16, #tpu.memory_space<vmem>>, %arg4: memref<1x128xf32, #tpu.memory_space<vmem>>, %arg5: memref<96x128xbf16, #tpu.memory_space<vmem>>, %arg6: memref<96x128xf32, #tpu.memory_space<vmem>>) attributes {dimension_semantics = [#tpu.dimension_semantics<parallel>, #tpu.dimension_semantics<parallel>], iteration_bounds = array<i64: 1, 1>, scalar_prefetch = 0 : i64, scratch_operands = 0 : i64, tpu.core_type = #tpu.core_type<tc>, window_params = [{transform_indices = @transform_0, window_bounds = array<i64: 96, 200>}, {transform_indices = @transform_1, window_bounds = array<i64: 200, 128>}, {transform_indices = @transform_2, window_bounds = array<i64: 1, 128>}, {transform_indices = @transform_3, window_bounds = array<i64: 96, 128>}, {transform_indices = @transform_4, window_bounds = array<i64: 96, 128>}]} {
    %c0 = arith.constant 0 : index
    %c0_0 = arith.constant 0 : index
    %0 = vector.load %arg2[%c0, %c0_0] : memref<96x200xbf16, #tpu.memory_space<vmem>>, vector<96x200xbf16>
    %c0_1 = arith.constant 0 : index
    %c0_2 = arith.constant 0 : index
    %1 = vector.load %arg3[%c0_1, %c0_2] : memref<200x128xbf16, #tpu.memory_space<vmem>>, vector<200x128xbf16>
    %cst = arith.constant dense<0.000000e+00> : vector<96x128xf32>
    %2 = tpu.matmul %0, %1, %cst {dimension_numbers = #tpu.dot_dimension_numbers<[1], [0], [0], [1], [0, 0, 1, 1], [], []>} : vector<96x200xbf16>, vector<200x128xbf16>, vector<96x128xf32> -> vector<96x128xf32>
    %c0_3 = arith.constant 0 : index
    %c0_4 = arith.constant 0 : index
    %3 = vector.load %arg4[%c0_3, %c0_4] : memref<1x128xf32, #tpu.memory_space<vmem>>, vector<1x128xf32>
    %4 = vector.broadcast %3 : vector<1x128xf32> to vector<96x128xf32>
    %5 = arith.addf %2, %4 : vector<96x128xf32>
    %c0_5 = arith.constant 0 : index
    %c0_6 = arith.constant 0 : index
    %6 = vector.load %arg5[%c0_5, %c0_6] : memref<96x128xbf16, #tpu.memory_space<vmem>>, vector<96x128xbf16>
    %7 = arith.extf %6 : vector<96x128xbf16> to vector<96x128xf32>
    %8 = arith.addf %5, %7 : vector<96x128xf32>
    %cst_7 = arith.constant 0.000000e+00 : f32
    %9 = vector.broadcast %cst_7 : f32 to vector<96x128xf32>
    %10 = arith.maximumf %8, %9 : vector<96x128xf32>
    %c0_8 = arith.constant 0 : index
    %c0_9 = arith.constant 0 : index
    %11 = vector.load %arg6[%c0_8, %c0_9] : memref<96x128xf32, #tpu.memory_space<vmem>>, vector<96x128xf32>
    tpu.vector_store %arg6[%c0_8, %c0_9], %10 {strides = array<i32>} : memref<96x128xf32, #tpu.memory_space<vmem>>, vector<96x128xf32>,
    return
  }
  func.func @transform_0(%arg0: i32, %arg1: i32) -> (i32, i32) {
    %c0_i32 = arith.constant 0 : i32
    %c0_i32_0 = arith.constant 0 : i32
    return %arg0, %c0_i32 : i32, i32
  }
  func.func @transform_1(%arg0: i32, %arg1: i32) -> (i32, i32) {
    %c0_i32 = arith.constant 0 : i32
    %c0_i32_0 = arith.constant 0 : i32
    return %c0_i32, %arg1 : i32, i32
  }
  func.func @transform_2(%arg0: i32, %arg1: i32) -> (i32, i32) {
    %c0_i32 = arith.constant 0 : i32
    %c0_i32_0 = arith.constant 0 : i32
    return %c0_i32, %arg1 : i32, i32
  }
  func.func @transform_3(%arg0: i32, %arg1: i32) -> (i32, i32) {
    %c0_i32 = arith.constant 0 : i32
    return %arg0, %arg1 : i32, i32
  }
  func.func @transform_4(%arg0: i32, %arg1: i32) -> (i32, i32) {
    %c0_i32 = arith.constant 0 : i32
    return %arg0, %arg1 : i32, i32
  }
}

</mosaic_0001>

<bundles_post_ra>
// kernel: tpu_custom_call.1
= control target key start
LH: loop header
LB: loop body
LE: loop exit
PB: predicated region body
PF: predicated region fallthrough
CT: control target
= control target key end

     0   :  { %9 = vsyncpa [#allocation3], 0  ;;  %s779_s0 = inlined_call_operand.hbm [shape: bf16[96,200], index: 0, kind: input, shape index: {}]   ;;  %s780_s1 = inlined_call_operand.hbm [shape: bf16[200,128], index: 1, kind: input, shape index: {}]   ;;  %s781_s2 = inlined_call_operand.vmem [shape: f32[1,128], index: 2, kind: input, shape index: {}]   ;;  %s782_s3 = inlined_call_operand.hbm [shape: bf16[96,128], index: 3, kind: input, shape index: {}]   ;;  %s783_s4 = inlined_call_operand.hbm [shape: f32[96,128], index: 4, kind: output, shape index: {}]  }
   0x1   :  { %10 = vsyncpa [#allocation6], 0 }
   0x2   :  { %11 = vsyncpa [#allocation4], 0  ;;  %s636_s15 = smov [#allocation5]   ;;  %s542_s19 = scalar_lea.hbm %s780_s1, 1600 }
   0x3   :  { %s29_s16 = sshll.u32 %s636_s15, 4  ;;  %p543_p0 = scmp.ne.s32.totalorder %s780_s1, %s542_s19  ;;  %s30_s16 = int_to_ptr.vmem [resolvable:$true] %s29_s16 }
   0x4   :  { %p546_p1 = scmp.lt.u32.totalorder %s542_s19, %s780_s1 }
   0x6   :  { %p548_p2 = pnand %p546_p1, %p543_p0 }
   0x8   :  { %551 = shalt.err (!%p548_p2)
}
   0x9   :  { %s552_s24 = scalar_lea.vmem %s30_s16, 1600  ;;  %p557_p4 = scmp.lt.s32.totalorder %s30_s16, %s30_s16 }
   0xa   :  { %p553_p3 = scmp.ne.s32.totalorder %s30_s16, %s552_s24  ;;  %p558_p5 = scmp.lt.s32.totalorder %s552_s24, %s552_s24 }
   0xc   :  { %p559_p6 = por %p558_p5, %p557_p4 }
   0xe   :  { %p560_p7 = pnand %p559_p6, %p553_p3 }
  0x10   :  { %563 = shalt.err (!%p560_p7)
}
  0x11   :  { %s637_s25 = smov 64   ;;  %s638_s26 = smov 4  }
  0x12   :  { %35 = dma.hbm_to_vmem [thread:$0]  %s780_s1, 1600, %s30_s16, [#allocation6], %s637_s25, %s637_s25, %s638_s26  }
  0x13   :  { %s639_s29 = smov [#allocation2]   ;;  %s564_s7 = scalar_lea.hbm %s779_s0, 1536 }
  0x14   :  { %s17_s30 = sshll.u32 %s639_s29, 4  ;;  %p565_p8 = scmp.ne.s32.totalorder %s779_s0, %s564_s7  ;;  %s18_s30 = int_to_ptr.vmem [resolvable:$true] %s17_s30 }
  0x15   :  { %p568_p9 = scmp.lt.u32.totalorder %s564_s7, %s779_s0 }
  0x17   :  { %p570_p10 = pnand %p568_p9, %p565_p8 }
  0x19   :  { %573 = shalt.err (!%p570_p10)
}
  0x1a   :  { %s574_s12 = scalar_lea.vmem %s18_s30, 1536  ;;  %p579_p12 = scmp.lt.s32.totalorder %s18_s30, %s18_s30 }
  0x1b   :  { %p575_p11 = scmp.ne.s32.totalorder %s18_s30, %s574_s12  ;;  %p580_p13 = scmp.lt.s32.totalorder %s574_s12, %s574_s12 }
  0x1d   :  { %p581_p0 = por %p580_p13, %p579_p12 }
  0x1f   :  { %p582_p1 = pnand %p581_p0, %p575_p11 }
  0x21   :  { %585 = shalt.err (!%p582_p1)
}
  0x22   :  { %s640_s1 = smov 128   ;;  %s641_s13 = smov 8  }
  0x23   :  { %23 = dma.hbm_to_vmem [thread:$0]  %s779_s0, 1536, %s18_s30, [#allocation3], %s640_s1, %s640_s1, %s641_s13  }
  0x24   :  { %s642_s16 = smov [#allocation7]   ;;  %s586_s20 = scalar_lea.hbm %s782_s3, 768 }
  0x25   :  { %s43_s17 = sshll.u32 %s642_s16, 4  ;;  %p587_p2 = scmp.ne.s32.totalorder %s782_s3, %s586_s20  ;;  %s44_s17 = int_to_ptr.vmem [resolvable:$true] %s43_s17 }
  0x26   :  { %p590_p3 = scmp.lt.u32.totalorder %s586_s20, %s782_s3 }
  0x28   :  { %p592_p4 = pnand %p590_p3, %p587_p2 }
  0x2a   :  { %595 = shalt.err (!%p592_p4)
}
  0x2b   :  { %s596_s27 = scalar_lea.vmem %s44_s17, 768  ;;  %p601_p6 = scmp.lt.s32.totalorder %s44_s17, %s44_s17 }
  0x2c   :  { %p597_p5 = scmp.ne.s32.totalorder %s44_s17, %s596_s27  ;;  %p602_p7 = scmp.lt.s32.totalorder %s596_s27, %s596_s27 }
  0x2e   :  { %p603_p8 = por %p602_p7, %p601_p6 }
  0x30   :  { %p604_p9 = pnand %p603_p8, %p597_p5 }
  0x32   :  { %607 = shalt.err (!%p604_p9)
}
  0x33   :  { %49 = dma.hbm_to_vmem [thread:$0]  %s782_s3, 768, %s44_s17, [#allocation6], %s637_s25, %s637_s25, %s638_s26  }
  0x34   :  { %630 = dma.done.wait [#allocation3], 1536  }
  0x35   :  { %631 = vsyncadd [#allocation3], 4294965760 }
  0x36   :  { %632 = dma.done.wait [#allocation6], 2368  }
  0x37   :  { %633 = vsyncadd [#allocation6], 4294964928  ;;  %v643_v0 = vmov 0   ;;  %v511_v1 = vld [vmem:[#allocation5] sm:$0xff]   ;;  %v512_v2 = vld [vmem:[#allocation5 + $0x8] sm:$0xff]   ;;  %vm233_vm0 = vcmask 588800  }
  0x38   :  { %256 = vmatprep.subr.bf16.mxu0 %v643_v0  ;;  %476 = vmatprep.subr.bf16.mxu1 %v643_v0  ;;  %v513_v3 = vld [vmem:[#allocation5 + $0x10] sm:$0xff]   ;;  %v514_v4 = vld [vmem:[#allocation5 + $0x18] sm:$0xff]   ;;  %v526_v5 = vld [vmem:[#allocation2 + $0x4] ss:$8 sps:$4 sm:$0xff]   ;;  %vm252_vm1 = vcmask 1043456  }
  0x39   :  { %257 = vmatpush1.bf16.msra.mxu0 %v511_v1  ;;  %489 = vmatpush1.bf16.msra.mxu1 %v511_v1  ;;  %v515_v6 = vld [vmem:[#allocation5 + $0x20] sm:$0xff]   ;;  %v529_v7 = vld [vmem:[#allocation2 + $0x34] ss:$8 sps:$4 sm:$0xff]   ;;  %v516_v8 = vld [vmem:[#allocation5 + $0x28] sm:$0xff]  }
  0x3a   :  { %258 = vmatprep.subr.bf16.mxu0 %v643_v0  ;;  %477 = vmatprep.subr.bf16.mxu1 %v643_v0  ;;  %v517_v9 = vld [vmem:[#allocation5 + $0x30] sm:$0xff]   ;;  %v518_v10 = vld [vmem:[#allocation5 + $0x38] sm:$0xff]   ;;  %v519_v11 = vld [vmem:[#allocation5 + $0x40] sm:$0xff]  }
  0x3b   :  { %441 = vmatprep.mubr.msk.bf16.mxu0 %vm233_vm0, %v526_v5  ;;  %444 = vmatprep.mubr.msk.bf16.mxu1 %vm233_vm0, %v529_v7  ;;  %v520_v12 = vld [vmem:[#allocation5 + $0x48] sm:$0xff]   ;;  %v521_v13 = vld [vmem:[#allocation5 + $0x50] sm:$0xff]   ;;  %v522_v14 = vld [vmem:[#allocation5 + $0x58] sm:$0xff]  }
  0x3c   :  { %v523_v15 = vld [vmem:[#allocation5 + $0x60] ss:$0 sps:$4 sm:$0xff]   ;;  %v527_v18 = vld [vmem:[#allocation2 + $0x30] ss:$8 sps:$4 sm:$0xff]   ;;  %v530_v19 = vld [vmem:[#allocation2 + $0x14] ss:$8 sps:$4 sm:$0xff]  }
  0x3d   :  { %259 = vmatpush1.bf16.msra.mxu0 %v512_v2  ;;  %490 = vmatpush1.bf16.msra.mxu1 %v512_v2  ;;  %v254_v16 = vsel %vm252_vm1, %v523_v15, 0  ;;  %v524_v17 = vld [vmem:[#allocation2] ss:$8 sps:$4 sm:$0xff]   ;;  %v532_v20 = vld [vmem:[#allocation2 + $0x44] ss:$8 sps:$4 sm:$0xff]  }
  0x3e   :  { %260 = vmatprep.subr.bf16.mxu0 %v643_v0  ;;  %478 = vmatprep.subr.bf16.mxu1 %v643_v0  ;;  %v534_v21 = vld [vmem:[#allocation2 + $0x10] ss:$8 sps:$4 sm:$0xff]   ;;  %v535_v22 = vld [vmem:[#allocation2 + $0x40] ss:$8 sps:$4 sm:$0xff]   ;;  %v536_v23 = vld [vmem:[#allocation2 + $0x24] ss:$8 sps:$4 sm:$0xff]  }
  0x3f   :  { %v538_v24 = vld [vmem:[#allocation2 + $0x54] ss:$8 sps:$4 sm:$0xff]   ;;  %v540_v25 = vld [vmem:[#allocation2 + $0x20] ss:$8 sps:$4 sm:$0xff]   ;;  %v541_v26 = vld [vmem:[#allocation2 + $0x50] ss:$8 sps:$4 sm:$0xff]  }
  0x40   :  { %v448_v27 = vld [vmem:[#allocation7] sm:$0xff]   ;;  %v473_v28 = vld [vmem:[#allocation7 + $0x18] sm:$0xff]   ;;  %v471_v48 = vld [vmem:[#allocation7 + $0x8] sm:$0xff]  }
  0x41   :  { %261 = vmatpush1.bf16.msra.mxu0 %v513_v3  ;;  %491 = vmatpush1.bf16.msra.mxu1 %v513_v3  ;;  %v750_v29 = vld [vmem:[%s781_s2] ss:$0 sm:$0xff]  ;;  %v449_v30 = vunpack.c.l.bf16 %v448_v27  ;;  %v461_v31 = vunpack.c.l.bf16 %v473_v28  ;;  %v450_v38 = vunpack.c.h.bf16 %v448_v27  ;;  %v462_v39 = vunpack.c.h.bf16 %v473_v28  ;;  %v474_v49 = vld [vmem:[#allocation7 + $0x20] sm:$0xff]   ;;  %s644_s2 = smov [#allocation8]  }
  0x42   :  { %262 = vmatprep.subr.bf16.mxu0 %v643_v0  ;;  %479 = vmatprep.subr.bf16.mxu1 %v643_v0  ;;  %v453_v56 = vunpack.c.l.bf16 %v471_v48  ;;  %v465_v57 = vunpack.c.l.bf16 %v474_v49  ;;  %v466_v1 = vunpack.c.h.bf16 %v474_v49  ;;  %s402_s26 = sshll.u32 %s644_s2, 4  ;;  %s403_s26 = int_to_ptr.vmem [resolvable:$true] %s402_s26 }
  0x43   :  { %s608_s29 = scalar_lea.vmem %s403_s26, 1536  ;;  %p613_p11 = scmp.lt.s32.totalorder %s403_s26, %s403_s26 }
  0x44   :  { %p609_p10 = scmp.ne.s32.totalorder %s403_s26, %s608_s29  ;;  %p614_p12 = scmp.lt.s32.totalorder %s608_s29, %s608_s29 }
  0x45   :  { %263 = vmatpush1.bf16.msra.mxu0 %v514_v4  ;;  %492 = vmatpush1.bf16.msra.mxu1 %v514_v4 }
  0x46   :  { %264 = vmatprep.subr.bf16.mxu0 %v643_v0  ;;  %480 = vmatprep.subr.bf16.mxu1 %v643_v0  ;;  %p615_p13 = por %p614_p12, %p613_p11 }
  0x48   :  { %p616_p0 = pnand %p615_p13, %p609_p10 }
  0x49   :  { %265 = vmatpush1.bf16.msra.mxu0 %v515_v6  ;;  %493 = vmatpush1.bf16.msra.mxu1 %v515_v6 }
  0x4a   :  { %266 = vmatprep.subr.bf16.mxu0 %v643_v0  ;;  %481 = vmatprep.subr.bf16.mxu1 %v643_v0 }
  0x4d   :  { %267 = vmatpush1.bf16.msra.mxu0 %v516_v8  ;;  %494 = vmatpush1.bf16.msra.mxu1 %v516_v8 }
  0x4e   :  { %268 = vmatprep.subr.bf16.mxu0 %v643_v0  ;;  %482 = vmatprep.subr.bf16.mxu1 %v643_v0 }
  0x51   :  { %269 = vmatpush1.bf16.msra.mxu0 %v517_v9  ;;  %495 = vmatpush1.bf16.msra.mxu1 %v517_v9 }
  0x52   :  { %270 = vmatprep.subr.bf16.mxu0 %v643_v0  ;;  %483 = vmatprep.subr.bf16.mxu1 %v643_v0 }
  0x55   :  { %271 = vmatpush1.bf16.msra.mxu0 %v518_v10  ;;  %496 = vmatpush1.bf16.msra.mxu1 %v518_v10  ;;  %v472_v10 = vld [vmem:[#allocation7 + $0x10] sm:$0xff]  }
  0x56   :  { %272 = vmatprep.subr.bf16.mxu0 %v643_v0  ;;  %484 = vmatprep.subr.bf16.mxu1 %v643_v0 }
  0x59   :  { %273 = vmatpush1.bf16.msra.mxu0 %v519_v11  ;;  %497 = vmatpush1.bf16.msra.mxu1 %v519_v11  ;;  %v475_v11 = vld [vmem:[#allocation7 + $0x28] sm:$0xff]  }
  0x5a   :  { %274 = vmatprep.subr.bf16.mxu0 %v643_v0  ;;  %485 = vmatprep.subr.bf16.mxu1 %v643_v0  ;;  %v470_v27 = vunpack.c.h.bf16 %v475_v11 }
  0x5d   :  { %275 = vmatpush1.bf16.msra.mxu0 %v520_v12  ;;  %498 = vmatpush1.bf16.msra.mxu1 %v520_v12 }
  0x5e   :  { %276 = vmatprep.subr.bf16.mxu0 %v643_v0  ;;  %486 = vmatprep.subr.bf16.mxu1 %v643_v0 }
  0x61   :  { %277 = vmatpush1.bf16.msra.mxu0 %v521_v13  ;;  %499 = vmatpush1.bf16.msra.mxu1 %v521_v13 }
  0x62   :  { %278 = vmatprep.subr.bf16.mxu0 %v643_v0  ;;  %487 = vmatprep.subr.bf16.mxu1 %v643_v0 }
  0x65   :  { %279 = vmatpush1.bf16.msra.mxu0 %v522_v14  ;;  %500 = vmatpush1.bf16.msra.mxu1 %v522_v14 }
  0x66   :  { %280 = vmatprep.subr.bf16.mxu0 %v643_v0  ;;  %488 = vmatprep.subr.bf16.mxu1 %v643_v0  ;;  %v454_v0 = vunpack.c.h.bf16 %v471_v48 }
  0x69   :  { %281 = vmatpush1.bf16.msra.mxu0 %v254_v16  ;;  %501 = vmatpush1.bf16.msra.mxu1 %v254_v16 }
  0x6c   :  { %289 = vmatmul.mubr.bf16.vlgmr.msra.gmra.mrb[0].mxu0 %v524_v17  ;;  %313 = vmatmul.mubr.bf16.vlgmr.msra.gmra.mrb[0].mxu1 %v527_v18  ;;  %v457_v18 = vunpack.c.l.bf16 %v472_v10 }
  0x6d   :  { %442 = vmatprep.mubr.msk.bf16.mxu0 %vm233_vm0, %v530_v19  ;;  %445 = vmatprep.mubr.msk.bf16.mxu1 %vm233_vm0, %v532_v20  ;;  %v469_v19 = vunpack.c.l.bf16 %v475_v11 }
  0x74   :  { %297 = vmatmul.mubr.bf16.gmra.mrb[4].mxu0 %v534_v21  ;;  %321 = vmatmul.mubr.bf16.gmra.mrb[4].mxu1 %v535_v22 }
  0x75   :  { %443 = vmatprep.mubr.msk.bf16.mxu0 %vm233_vm0, %v536_v23  ;;  %446 = vmatprep.mubr.msk.bf16.mxu1 %vm233_vm0, %v538_v24 }
  0x7c   :  { %305 = vmatmul.mubr.bf16.gmra.mrb[8].mxu0 %v540_v25  ;;  %329 = vmatmul.mubr.bf16.gmra.mrb[8].mxu1 %v541_v26  ;;  %v458_v26 = vunpack.c.h.bf16 %v472_v10 }
 0x13f   :  { %v290_v32 = vpop.f32.mrb[0].mxu0  ;;  %v314_v33 = vpop.f32.mrb[0].mxu1 }
 0x140   :  { %v291_v34 = vadd.f32 %v750_v29, %v290_v32  ;;  %v315_v35 = vadd.f32 %v750_v29, %v314_v33  ;;  %v292_v36 = vpop.f32.mrb[1].mxu0  ;;  %v316_v37 = vpop.f32.mrb[1].mxu1 }
 0x141   :  { %v293_v40 = vpop.f32.mrb[2].mxu0  ;;  %v317_v41 = vpop.f32.mrb[2].mxu1 }
 0x142   :  { %v361_v42 = vadd.f32 %v449_v30, %v291_v34  ;;  %v367_v43 = vadd.f32 %v461_v31, %v315_v35  ;;  %v294_v44 = vadd.f32 %v750_v29, %v293_v40  ;;  %v318_v45 = vadd.f32 %v750_v29, %v317_v41  ;;  %v295_v46 = vpop.f32.mrb[3].mxu0  ;;  %v319_v47 = vpop.f32.mrb[3].mxu1 }
 0x144   :  { %v373_v50 = vmax.f32 %v361_v42, 0.0  ;;  %v379_v51 = vmax.f32 %v367_v43, 0.0  ;;  %v362_v52 = vadd.f32 %v450_v38, %v294_v44  ;;  %v368_v53 = vadd.f32 %v462_v39, %v318_v45 }
 0x146   :  { %385 = vst [vmem:[#allocation8] sm:$0xff] %v373_v50  ;;  %391 = vst [vmem:[#allocation8 + $0x30] sm:$0xff] %v379_v51  ;;  %v374_v54 = vmax.f32 %v362_v52, 0.0  ;;  %v380_v55 = vmax.f32 %v368_v53, 0.0 }
 0x147   :  { %v298_v58 = vpop.f32.mrb[4].mxu0  ;;  %v322_v59 = vpop.f32.mrb[4].mxu1 }
 0x148   :  { %386 = vst [vmem:[#allocation8 + $0x8] sm:$0xff] %v374_v54  ;;  %392 = vst [vmem:[#allocation8 + $0x38] sm:$0xff] %v380_v55  ;;  %v299_v60 = vadd.f32 %v750_v29, %v298_v58  ;;  %v323_v61 = vadd.f32 %v750_v29, %v322_v59  ;;  %v300_v62 = vpop.f32.mrb[5].mxu0  ;;  %v324_v63 = vpop.f32.mrb[5].mxu1 }
 0x149   :  { %v301_v2 = vpop.f32.mrb[6].mxu0  ;;  %v325_v3 = vpop.f32.mrb[6].mxu1 }
 0x14a   :  { %v363_v4 = vadd.f32 %v453_v56, %v299_v60  ;;  %v369_v5 = vadd.f32 %v465_v57, %v323_v61  ;;  %v302_v6 = vadd.f32 %v750_v29, %v301_v2  ;;  %v326_v7 = vadd.f32 %v750_v29, %v325_v3  ;;  %v303_v8 = vpop.f32.mrb[7].mxu0  ;;  %v327_v9 = vpop.f32.mrb[7].mxu1 }
 0x14c   :  { %v375_v12 = vmax.f32 %v363_v4, 0.0  ;;  %v381_v13 = vmax.f32 %v369_v5, 0.0  ;;  %v364_v14 = vadd.f32 %v454_v0, %v302_v6  ;;  %v370_v15 = vadd.f32 %v466_v1, %v326_v7 }
 0x14e   :  { %387 = vst [vmem:[#allocation8 + $0x10] sm:$0xff] %v375_v12  ;;  %393 = vst [vmem:[#allocation8 + $0x40] sm:$0xff] %v381_v13  ;;  %v376_v16 = vmax.f32 %v364_v14, 0.0  ;;  %v382_v17 = vmax.f32 %v370_v15, 0.0 }
 0x14f   :  { %v306_v20 = vpop.f32.mrb[8].mxu0  ;;  %v330_v21 = vpop.f32.mrb[8].mxu1 }
 0x150   :  { %388 = vst [vmem:[#allocation8 + $0x18] sm:$0xff] %v376_v16  ;;  %394 = vst [vmem:[#allocation8 + $0x48] sm:$0xff] %v382_v17  ;;  %v307_v22 = vadd.f32 %v750_v29, %v306_v20  ;;  %v331_v23 = vadd.f32 %v750_v29, %v330_v21  ;;  %v308_v24 = vpop.f32.mrb[9].mxu0  ;;  %v332_v25 = vpop.f32.mrb[9].mxu1 }
 0x151   :  { %v309_v28 = vpop.f32.mrb[10].mxu0  ;;  %v333_v30 = vpop.f32.mrb[10].mxu1 }
 0x152   :  { %v365_v31 = vadd.f32 %v457_v18, %v307_v22  ;;  %v371_v32 = vadd.f32 %v469_v19, %v331_v23  ;;  %v310_v33 = vadd.f32 %v750_v29, %v309_v28  ;;  %v334_v34 = vadd.f32 %v750_v29, %v333_v30  ;;  %v311_v35 = vpop.f32.mrb[11].mxu0  ;;  %v335_v36 = vpop.f32.mrb[11].mxu1 }
 0x154   :  { %v377_v37 = vmax.f32 %v365_v31, 0.0  ;;  %v383_v38 = vmax.f32 %v371_v32, 0.0  ;;  %v366_v39 = vadd.f32 %v458_v26, %v310_v33  ;;  %v372_v40 = vadd.f32 %v470_v27, %v334_v34 }
 0x156   :  { %389 = vst [vmem:[#allocation8 + $0x20] sm:$0xff] %v377_v37  ;;  %395 = vst [vmem:[#allocation8 + $0x50] sm:$0xff] %v383_v38  ;;  %v378_v41 = vmax.f32 %v366_v39, 0.0  ;;  %v384_v42 = vmax.f32 %v372_v40, 0.0 }
 0x158   :  { %390 = vst [vmem:[#allocation8 + $0x28] sm:$0xff] %v378_v41  ;;  %396 = vst [vmem:[#allocation8 + $0x58] sm:$0xff] %v384_v42 }
 0x159   :  { %619 = shalt.err (!%p616_p0)
}
 0x15a   :  { %s620_s6 = scalar_lea.hbm %s783_s4, 1536 }
 0x15b   :  { %p621_p1 = scmp.ne.s32.totalorder %s783_s4, %s620_s6  ;;  %p624_p2 = scmp.lt.u32.totalorder %s620_s6, %s783_s4 }
 0x15d   :  { %p626_p3 = pnand %p624_p2, %p621_p1 }
 0x15f   :  { %629 = shalt.err (!%p626_p3)
}
 0x160   :  { %408 = dma.vmem_to_hbm [thread:$0]  %s403_s26, 1536, %s783_s4, [#allocation4], %s640_s1, %s640_s1, %s641_s13  }
 0x161   :  { %634 = dma.done.wait [#allocation4], 1536  }
 0x162   :  { %635 = vsyncadd [#allocation4], 4294965760 }
 0x163   :  { %412 = vsyncpa [#allocation3], 1 }
 0x164   :  { %413 = vsyncpa [#allocation6], 1 }
 0x165   :  { %414 = vsyncpa [#allocation4], 1 }

</bundles_post_ra>
